<compile_context>
chip_gen: v7x
topology: tpu7x:2x2x1
jax: 0.10.0
libtpu: 0.0.40
codegen_flags: <defaults>
</compile_context>

<pallas_src>
import jax
import jax.numpy as jnp
from jax import lax
from jax.experimental import pallas as pl
from jax.experimental.pallas import tpu as pltpu


def _round_up(x, m):
    return ((x + m - 1) // m) * m


_VMEM_LIMIT = 32 * 1024 * 1024  # explicit scope: > v5e's 16 MiB default, <= v7x budget


# ----------------------------- Pallas kernels ------------------------------

def _conv_relu_pool_kernel(p_ref, w_ref, b_ref, o_ref):
    """p_ref: (K, 4*TILE) bf16 q-blocked patches (q-major 128-aligned lane blocks)
       w_ref: (Cout, K) bf16, b_ref: (Cout, 1) f32, o_ref: (Cout, TILE) bf16.
       Computes relu(max_q (W @ P_q) + b) == 2x2 maxpool of relu(conv + b)
       with a SINGLE MXU dot; the pool max is a VPU max over static lane slices."""
    tile = o_ref.shape[-1]
    acc = jnp.dot(w_ref[...], p_ref[...], preferred_element_type=jnp.float32)  # (Cout, 4*TILE)
    r = acc[:, 0:tile]
    for q in range(1, 4):  # static unroll; slices start at multiples of 128 lanes
        r = jnp.maximum(r, acc[:, q * tile:(q + 1) * tile])
    o_ref[...] = jnp.maximum(r + b_ref[...], 0.0).astype(o_ref.dtype)


def _linear_kernel(x_ref, w_ref, b_ref, o_ref):
    """x_ref: (TN, F) bf16, w_ref: (F, Cp) bf16, b_ref: (1, Cp) f32, o_ref: (TN, Cp) f32."""
    o_ref[...] = (
        jnp.dot(x_ref[...], w_ref[...], preferred_element_type=jnp.float32) + b_ref[...]
    )


# ------------------------------- glue (JAX) --------------------------------

def _im2col_pooled_qblocked(a_cfirst, tile, ksize=3, pad=1, pool=2):
    """Channel-first activations (C, N, H, W) -> q-blocked pooled patches.

    Returns (K, NT*4*TILE) bf16 with K = ksize*ksize*C ordered ((kh,kw) major,
    cin minor); within each TILE-sized token block the 4 pool-window positions
    are laid out q-major so a single dot + lane-slice max implements conv+pool."""
    a_cfirst = a_cfirst.astype(jnp.bfloat16)           # cast BEFORE any patch copies
    c, n, h, w = a_cfirst.shape
    ho, wo = h // pool, w // pool
    m = n * ho * wo
    m_pad = _round_up(m, tile)
    nt = m_pad // tile

    ap = jnp.pad(a_cfirst, ((0, 0), (0, 0), (pad, pad), (pad, pad)))
    blocks = []
    for kh in range(ksize):
        for kw in range(ksize):
            qs = []
            for ph in range(pool):
                for pw in range(pool):
                    s = ap[:, :, ph + kh::pool, pw + kw::pool][:, :, :ho, :wo]  # (C,N,Ho,Wo)
                    s = s.reshape(c, m)                 # wide minor dim (M), lane-friendly
                    if m_pad != m:
                        s = jnp.pad(s, ((0, 0), (0, m_pad - m)))
                    qs.append(s.reshape(c, nt, tile))
            blocks.append(jnp.stack(qs, axis=2))        # (C, NT, 4, TILE)
    p = jnp.concatenate(blocks, axis=0)                 # (K, NT, 4, TILE)
    return p.reshape(ksize * ksize * c, nt * pool * pool * tile), m


def _conv_w_to_mat(w_oihw):
    """(Cout, Cin, 3, 3) -> (Cout, 9*Cin) matching the ((kh,kw), cin) patch order."""
    cout = w_oihw.shape[0]
    return jnp.transpose(w_oihw, (0, 2, 3, 1)).reshape(cout, -1)


# ----------------------------- kernel wrappers ------------------------------

def conv_relu_pool(a_cfirst, w_oihw, b, tile_m=2048):
    """a_cfirst: (Cin, N, H, W) -> bf16 (Cout, N, H//2, W//2): maxpool(relu(conv+b))."""
    cin, n, h, w = a_cfirst.shape
    cout = w_oihw.shape[0]
    ho, wo = h // 2, w // 2
    m = n * ho * wo
    k = 9 * cin

    tile = min(_round_up(tile_m, 128), _round_up(m, 128))   # lane-aligned token tile
    m_pad = _round_up(m, tile)
    nt = m_pad // tile

    p, _ = _im2col_pooled_qblocked(a_cfirst, tile)           # (K, NT*4*TILE) bf16
    w_mat = _conv_w_to_mat(w_oihw).astype(jnp.bfloat16)      # (Cout, K)
    b_col = b.reshape(cout, 1).astype(jnp.float32)

    out = pl.pallas_call(
        _conv_relu_pool_kernel,
        out_shape=jax.ShapeDtypeStruct((cout, m_pad), jnp.bfloat16),
        grid_spec=pltpu.PrefetchScalarGridSpec(
            num_scalar_prefetch=0,
            grid=(nt,),
            in_specs=[
                pl.BlockSpec((k, 4 * tile), lambda i: (0, i)),
                pl.BlockSpec((cout, k), lambda i: (0, 0)),
                pl.BlockSpec((cout, 1), lambda i: (0, 0)),
            ],
            out_specs=pl.BlockSpec((cout, tile), lambda i: (0, i)),
        ),
        compiler_params=pltpu.CompilerParams(
            dimension_semantics=("parallel",),
            vmem_limit_bytes=_VMEM_LIMIT,
        ),
    )(p, w_mat, b_col)
    return out[:, :m].reshape(cout, n, ho, wo)


def linear(x, w_mat, b_row, tile_n=1024):
    """x: (N, F), w_mat: (F, C), b_row: (1, C) -> (N, C) f32 with lane-dense stores."""
    n, f = x.shape
    c = w_mat.shape[1]

    c_pad = _round_up(c, 128)                 # lane-dense output (unmasked vst)
    if c_pad != c:
        w_mat = jnp.pad(w_mat, ((0, 0), (0, c_pad - c)))
        b_row = jnp.pad(b_row, ((0, 0), (0, c_pad - c)))

    tile = min(_round_up(tile_n, 8), _round_up(n, 8))
    n_pad = _round_up(n, tile)
    if n_pad != n:
        x = jnp.pad(x, ((0, n_pad - n), (0, 0)))

    out = pl.pallas_call(
        _linear_kernel,
        out_shape=jax.ShapeDtypeStruct((n_pad, c_pad), jnp.float32),
        grid_spec=pltpu.PrefetchScalarGridSpec(
            num_scalar_prefetch=0,
            grid=(n_pad // tile,),
            in_specs=[
                pl.BlockSpec((tile, f), lambda i: (i, 0)),
                pl.BlockSpec((f, c_pad), lambda i: (0, 0)),
                pl.BlockSpec((1, c_pad), lambda i: (0, 0)),
            ],
            out_specs=pl.BlockSpec((tile, c_pad), lambda i: (i, 0)),
        ),
        compiler_params=pltpu.CompilerParams(
            dimension_semantics=("parallel",),
            vmem_limit_bytes=_VMEM_LIMIT,
        ),
    )(x.astype(jnp.bfloat16), w_mat.astype(jnp.bfloat16), b_row.astype(jnp.float32))
    return out[:n, :c]


def cnnet_forward(x_nchw, params):
    w1, b1, w2, b2, wfc, bfc = params
    n = x_nchw.shape[0]

    # channel-first bf16 activations (C, N, H, W) end to end
    a0 = jnp.transpose(x_nchw, (1, 0, 2, 3)).astype(jnp.bfloat16)   # (1, N, 28, 28)

    a1 = conv_relu_pool(a0, w1, b1)                                 # (8, N, 14, 14) bf16
    a2 = conv_relu_pool(a1, w2, b2)                                 # (16, N, 7, 7) bf16

    # flatten in PyTorch NCHW order (c*49 + h*7 + w), then fc1
    flat = jnp.transpose(a2, (1, 0, 2, 3)).reshape(n, -1)           # (N, 16*7*7) bf16
    return linear(flat, wfc.T, bfc.reshape(1, -1))                  # (N, 10) f32


# --------------------------- pure-JAX reference -----------------------------

def cnnet_reference(x_nchw, params):
    w1, b1, w2, b2, wfc, bfc = params
    dn = ("NCHW", "OIHW", "NCHW")
    y = lax.conv_general_dilated(x_nchw, w1, (1, 1), ((1, 1), (1, 1)),
                                 dimension_numbers=dn, precision=lax.Precision.HIGHEST)
    y = jnp.maximum(y + b1[None, :, None, None], 0.0)
    y = lax.reduce_window(y, -jnp.inf, lax.max, (1, 1, 2, 2), (1, 1, 2, 2), "VALID")
    y = lax.conv_general_dilated(y, w2, (1, 1), ((1, 1), (1, 1)),
                                 dimension_numbers=dn, precision=lax.Precision.HIGHEST)
    y = jnp.maximum(y + b2[None, :, None, None], 0.0)
    y = lax.reduce_window(y, -jnp.inf, lax.max, (1, 1, 2, 2), (1, 1, 2, 2), "VALID")
    y = y.reshape(y.shape[0], -1)
    return jnp.dot(y, wfc.T, precision=lax.Precision.HIGHEST) + bfc


# ----------------------------------- main -----------------------------------

if __name__ == "__main__":
    key = jax.random.PRNGKey(0)
    kx, k1, k2, k3, k4, k5, k6 = jax.random.split(key, 7)

    # fc1 expects 16*7*7 features -> spatial input must be 28x28, in_channels=1
    N, CIN, H, W = 2, 1, 28, 28
    NUM_CLASSES = 10

    x = jax.random.normal(kx, (N, CIN, H, W), jnp.float32)
    w1 = jax.random.normal(k1, (8, CIN, 3, 3), jnp.float32) * 0.1
    b1 = jax.random.normal(k2, (8,), jnp.float32) * 0.1
    w2 = jax.random.normal(k3, (16, 8, 3, 3), jnp.float32) * 0.1
    b2 = jax.random.normal(k4, (16,), jnp.float32) * 0.1
    wfc = jax.random.normal(k5, (NUM_CLASSES, 16 * 7 * 7), jnp.float32) * 0.05
    bfc = jax.random.normal(k6, (NUM_CLASSES,), jnp.float32) * 0.1
    params = (w1, b1, w2, b2, wfc, bfc)

    out = jax.block_until_ready(cnnet_forward(x, params))
    ref = jax.block_until_ready(cnnet_reference(x, params))

    assert out.shape == (N, NUM_CLASSES), out.shape
    # Tolerance accounts for intentional end-to-end bf16 intermediates (f32 accumulation).
    max_err = float(jnp.max(jnp.abs(out - ref)))
    assert max_err < 5e-2, f"mismatch vs reference, max abs err = {max_err}"
    print("KERNEL_OK")
</pallas_src>

<mosaic_0001>
module attributes {stable_mosaic.version = 11 : i64} {
  func.func @_conv_relu_pool_kernel(%arg0: i32, %arg1: memref<9x2048xbf16, #tpu.memory_space<vmem>>, %arg2: memref<8x9xbf16, #tpu.memory_space<vmem>>, %arg3: memref<8x1xf32, #tpu.memory_space<vmem>>, %arg4: memref<8x512xbf16, #tpu.memory_space<vmem>>) attributes {dimension_semantics = [#tpu.dimension_semantics<parallel>], iteration_bounds = array<i64: 1>, scalar_prefetch = 0 : i64, scratch_operands = 0 : i64, tpu.core_type = #tpu.core_type<tc>, window_params = [{transform_indices = @transform_0, window_bounds = array<i64: 9, 2048>}, {pipeline_mode = #tpu.pipeline_mode<synchronous>, transform_indices = @transform_1, window_bounds = array<i64: 8, 9>}, {pipeline_mode = #tpu.pipeline_mode<synchronous>, transform_indices = @transform_2, window_bounds = array<i64: 8, 1>}, {transform_indices = @transform_3, window_bounds = array<i64: 8, 512>}]} {
    %c0 = arith.constant 0 : index
    %c0_0 = arith.constant 0 : index
    %0 = vector.load %arg2[%c0, %c0_0] : memref<8x9xbf16, #tpu.memory_space<vmem>>, vector<8x9xbf16>
    %c0_1 = arith.constant 0 : index
    %c0_2 = arith.constant 0 : index
    %1 = vector.load %arg1[%c0_1, %c0_2] : memref<9x2048xbf16, #tpu.memory_space<vmem>>, vector<9x2048xbf16>
    %cst = arith.constant dense<0.000000e+00> : vector<8x2048xf32>
    %2 = tpu.matmul %0, %1, %cst {dimension_numbers = #tpu.dot_dimension_numbers<[1], [0], [0], [1], [0, 0, 1, 1], [], []>} : vector<8x9xbf16>, vector<9x2048xbf16>, vector<8x2048xf32> -> vector<8x2048xf32>
    %3 = vector.extract_strided_slice %2 {offsets = [0, 0], sizes = [8, 512], strides = [1, 1]} : vector<8x2048xf32> to vector<8x512xf32>
    %4 = vector.extract_strided_slice %2 {offsets = [0, 512], sizes = [8, 512], strides = [1, 1]} : vector<8x2048xf32> to vector<8x512xf32>
    %5 = arith.maximumf %3, %4 : vector<8x512xf32>
    %6 = vector.extract_strided_slice %2 {offsets = [0, 1024], sizes = [8, 512], strides = [1, 1]} : vector<8x2048xf32> to vector<8x512xf32>
    %7 = arith.maximumf %5, %6 : vector<8x512xf32>
    %8 = vector.extract_strided_slice %2 {offsets = [0, 1536], sizes = [8, 512], strides = [1, 1]} : vector<8x2048xf32> to vector<8x512xf32>
    %9 = arith.maximumf %7, %8 : vector<8x512xf32>
    %c0_3 = arith.constant 0 : index
    %c0_4 = arith.constant 0 : index
    %10 = vector.load %arg3[%c0_3, %c0_4] : memref<8x1xf32, #tpu.memory_space<vmem>>, vector<8x1xf32>
    %11 = vector.broadcast %10 : vector<8x1xf32> to vector<8x512xf32>
    %12 = arith.addf %9, %11 : vector<8x512xf32>
    %cst_5 = arith.constant 0.000000e+00 : f32
    %13 = vector.broadcast %cst_5 : f32 to vector<8x512xf32>
    %14 = arith.maximumf %12, %13 : vector<8x512xf32>
    %15 = arith.truncf %14 : vector<8x512xf32> to vector<8x512xbf16>
    %c0_6 = arith.constant 0 : index
    %c0_7 = arith.constant 0 : index
    %16 = vector.load %arg4[%c0_6, %c0_7] : memref<8x512xbf16, #tpu.memory_space<vmem>>, vector<8x512xbf16>
    tpu.vector_store %arg4[%c0_6, %c0_7], %15 {strides = array<i32>} : memref<8x512xbf16, #tpu.memory_space<vmem>>, vector<8x512xbf16>,
    return
  }
  func.func @transform_0(%arg0: i32) -> (i32, i32) {
    %c0_i32 = arith.constant 0 : i32
    %c0_i32_0 = arith.constant 0 : i32
    return %c0_i32, %arg0 : i32, i32
  }
  func.func @transform_1(%arg0: i32) -> (i32, i32) {
    %c0_i32 = arith.constant 0 : i32
    %c0_i32_0 = arith.constant 0 : i32
    %c0_i32_1 = arith.constant 0 : i32
    return %c0_i32, %c0_i32_0 : i32, i32
  }
  func.func @transform_2(%arg0: i32) -> (i32, i32) {
    %c0_i32 = arith.constant 0 : i32
    %c0_i32_0 = arith.constant 0 : i32
    %c0_i32_1 = arith.constant 0 : i32
    return %c0_i32, %c0_i32_0 : i32, i32
  }
  func.func @transform_3(%arg0: i32) -> (i32, i32) {
    %c0_i32 = arith.constant 0 : i32
    %c0_i32_0 = arith.constant 0 : i32
    return %c0_i32, %arg0 : i32, i32
  }
}

</mosaic_0001>

<bundles_post_ra>
// kernel: tpu_custom_call.1
= control target key start
LH: loop header
LB: loop body
LE: loop exit
PB: predicated region body
PF: predicated region fallthrough
CT: control target
= control target key end

     0   :  { %8 = vsyncpa [#allocation3], 0  ;;  %s728_s0 = inlined_call_operand.hbm [shape: bf16[9,2048], index: 0, kind: input, shape index: {}]   ;;  %s729_s1 = inlined_call_operand.vmem [shape: bf16[8,9], index: 1, kind: input, shape index: {}]   ;;  %s730_s2 = inlined_call_operand.vmem [shape: f32[8,1], index: 2, kind: input, shape index: {}]   ;;  %s731_s3 = inlined_call_operand.hbm [shape: bf16[8,512], index: 3, kind: output, shape index: {}]  }
   0x1   :  { %9 = vsyncpa [#allocation4], 0  ;;  %s637_s12 = smov [#allocation2]   ;;  %s589_s16 = scalar_lea.hbm %s728_s0, 2048 }
   0x2   :  { %s15_s13 = sshll.u32 %s637_s12, 4  ;;  %p590_p0 = scmp.ne.s32.totalorder %s728_s0, %s589_s16  ;;  %s16_s13 = int_to_ptr.vmem [resolvable:$true] %s15_s13 }
   0x3   :  { %p593_p1 = scmp.lt.u32.totalorder %s589_s16, %s728_s0 }
   0x5   :  { %p595_p2 = pnand %p593_p1, %p590_p0 }
   0x7   :  { %598 = shalt.err (!%p595_p2)
}
   0x8   :  { %s599_s21 = scalar_lea.vmem %s16_s13, 2048  ;;  %p604_p4 = scmp.lt.s32.totalorder %s16_s13, %s16_s13 }
   0x9   :  { %p600_p3 = scmp.ne.s32.totalorder %s16_s13, %s599_s21  ;;  %p605_p5 = scmp.lt.s32.totalorder %s599_s21, %s599_s21 }
   0xb   :  { %p606_p6 = por %p605_p5, %p604_p4 }
   0xd   :  { %p607_p7 = pnand %p606_p6, %p600_p3 }
   0xf   :  { %610 = shalt.err (!%p607_p7)
}
  0x10   :  { %s638_s22 = smov 1024   ;;  %s639_s23 = smov 64  }
  0x11   :  { %21 = dma.hbm_to_vmem [thread:$0]  %s728_s0, 2048, %s16_s13, [#allocation3], %s638_s22, %s638_s22, %s639_s23  }
  0x12   :  { %633 = dma.done.wait [#allocation3], 2048  }
  0x13   :  { %634 = vsyncadd [#allocation3], 4294965248  ;;  %vm115_vm0 = vcmask 1043456   ;;  %v640_v0 = vmov 0   ;;  %vm116_vm1 = vcmask 1044480   ;;  %v641_v1 = vmov 65535  }
  0x14   :  { %199 = vmatprep.mubr.bf16.mxu0 %v640_v0  ;;  %240 = vmatprep.mubr.bf16.mxu1 %v640_v0  ;;  %v117_v2 = vsel %vm115_vm0, 4294967295, %v641_v1  ;;  %v31_v3 = vld [vmem:[#allocation2] sm:$0xff]  ;;  %v32_v6 = vld [vmem:[#allocation2 + $0x8] sm:$0xff]  ;;  %v33_v10 = vld [vmem:[#allocation2 + $0x10] sm:$0xff]  ;;  %vm111_vm2 = vcmask 72704  }
  0x15   :  { %588 = vset.pattern.permute.xlu0 %v640_v0  ;;  %v39_v4 = vld [vmem:[#allocation2 + $0x40] sm:$0x11]  ;;  %v678_v5 = vsel %vm116_vm1, %v117_v2, 0  ;;  %v40_v8 = vld [vmem:[#allocation2 + $0x48] sm:$0x11]  ;;  %v34_v14 = vld [vmem:[#allocation2 + $0x18] sm:$0xff] }
  0x16   :  { %v555_v7 = vcombine.high %v31_v3, %v39_v4  ;;  %v554_v9 = vcombine.low %v31_v3, %v39_v4  ;;  %v557_v11 = vcombine.high %v32_v6, %v40_v8  ;;  %v556_v12 = vcombine.low %v32_v6, %v40_v8  ;;  %v41_v13 = vld [vmem:[#allocation2 + $0x50] sm:$0x11]  ;;  %v42_v15 = vld [vmem:[#allocation2 + $0x58] sm:$0x11]  ;;  %v35_v20 = vld [vmem:[#allocation2 + $0x20] sm:$0xff] }
  0x17   :  { %v558_v18 = vcombine.low %v33_v10, %v41_v13  ;;  %v559_v19 = vcombine.high %v33_v10, %v41_v13  ;;  %v43_v21 = vld [vmem:[#allocation2 + $0x60] sm:$0x11]  ;;  %v560_v24 = vcombine.low %v34_v14, %v42_v15  ;;  %v561_v25 = vcombine.high %v34_v14, %v42_v15  ;;  %v36_v26 = vld [vmem:[#allocation2 + $0x28] sm:$0xff]  ;;  %v37_v38 = vld [vmem:[#allocation2 + $0x30] sm:$0xff] }
  0x18   :  { %v123_v16 = vand.u32 %v555_v7, %v678_v5  ;;  %v120_v17 = vand.u32 %v554_v9, %v678_v5  ;;  %v129_v22 = vand.u32 %v557_v11, %v678_v5  ;;  %v126_v23 = vand.u32 %v556_v12, %v678_v5  ;;  %v44_v27 = vld [vmem:[#allocation2 + $0x68] sm:$0x11]  ;;  %v30_v30 = vld [vmem:[%s729_s1] sm:$0xf]  ;;  %v45_v39 = vld [vmem:[#allocation2 + $0x70] sm:$0x11] }
  0x19   :  { %v135_v28 = vand.u32 %v559_v19, %v678_v5  ;;  %v563_v29 = vcombine.high %v35_v20, %v43_v21  ;;  %v141_v31 = vand.u32 %v561_v25, %v678_v5  ;;  %v132_v32 = vand.u32 %v558_v18, %v678_v5  ;;  %v507_v33 = vld [vmem:[%s730_s2] sm:$0xff]  ;;  %v38_v41 = vld [vmem:[#allocation2 + $0x38] sm:$0xff]  ;;  %s642_s1 = smov [#allocation5]  }
  0x1a   :  { %167 = vmatprep.subr.bf16.mxu0 %v123_v16  ;;  %208 = vmatprep.subr.bf16.mxu1 %v129_v22  ;;  %v138_v34 = vand.u32 %v560_v24, %v678_v5  ;;  %v565_v35 = vcombine.high %v36_v26, %v44_v27  ;;  %v562_v40 = vcombine.low %v35_v20, %v43_v21  ;;  %v46_v42 = vld [vmem:[#allocation2 + $0x78] sm:$0x11]  ;;  %s545_s2 = sshll.u32 %s642_s1, 4  ;;  %s546_s2 = int_to_ptr.vmem [resolvable:$true] %s545_s2 }
  0x1b   :  { %168 = vmatpush1.bf16.msra.mxu0 %v120_v17  ;;  %209 = vmatpush1.bf16.msra.mxu1 %v126_v23  ;;  %v147_v36 = vand.u32 %v563_v29, %v678_v5  ;;  %v564_v43 = vcombine.low %v36_v26, %v44_v27  ;;  %v567_v44 = vcombine.high %v37_v38, %v45_v39  ;;  %s611_s29 = scalar_lea.vmem %s546_s2, 256  ;;  %p616_p9 = scmp.lt.s32.totalorder %s546_s2, %s546_s2 }
  0x1c   :  { %249 = vmatprep.subr.bf16.mxu0 %v135_v28  ;;  %290 = vmatprep.subr.bf16.mxu1 %v141_v31  ;;  %v153_v37 = vand.u32 %v565_v35, %v678_v5  ;;  %v569_v45 = vcombine.high %v38_v41, %v46_v42  ;;  %v144_v46 = vand.u32 %v562_v40, %v678_v5  ;;  %p612_p8 = scmp.ne.s32.totalorder %s546_s2, %s611_s29  ;;  %p617_p10 = scmp.lt.s32.totalorder %s611_s29, %s611_s29 }
  0x1d   :  { %510 = vperm.xlu0 %588, %v507_v33   ;;  %v150_v47 = vand.u32 %v564_v43, %v678_v5  ;;  %v159_v48 = vand.u32 %v567_v44, %v678_v5  ;;  %v566_v50 = vcombine.low %v37_v38, %v45_v39  ;;  %v568_v51 = vcombine.low %v38_v41, %v46_v42 }
  0x1e   :  { %570 = vmatmul.mubr.msk.bf16.vlgmr.msra.gmra.mrb[0].mxu0 %vm111_vm2, %v30_v30  ;;  %571 = vmatmul.mubr.msk.bf16.vlgmr.msra.gmra.mrb[0].mxu1 %vm111_vm2, %v30_v30  ;;  %v165_v49 = vand.u32 %v569_v45, %v678_v5  ;;  %p618_p11 = por %p617_p10, %p616_p9 }
  0x1f   :  { %250 = vmatpush1.bf16.msra.mxu0 %v132_v32  ;;  %291 = vmatpush1.bf16.msra.mxu1 %v138_v34  ;;  %v156_v52 = vand.u32 %v566_v50, %v678_v5  ;;  %v162_v53 = vand.u32 %v568_v51, %v678_v5 }
  0x20   :  { %281 = vmatprep.mubr.bf16.mxu0 %v640_v0  ;;  %322 = vmatprep.mubr.bf16.mxu1 %v640_v0  ;;  %p619_p12 = pnand %p618_p11, %p612_p8 }
  0x21   :  { %331 = vmatprep.subr.bf16.mxu0 %v147_v36  ;;  %372 = vmatprep.subr.bf16.mxu1 %v153_v37 }
  0x26   :  { %572 = vmatmul.mubr.msk.bf16.vlgmr.msra.gmra.mrb[4].mxu0 %vm111_vm2, %v30_v30  ;;  %573 = vmatmul.mubr.msk.bf16.vlgmr.msra.gmra.mrb[4].mxu1 %vm111_vm2, %v30_v30 }
  0x27   :  { %332 = vmatpush1.bf16.msra.mxu0 %v144_v46  ;;  %373 = vmatpush1.bf16.msra.mxu1 %v150_v47 }
  0x28   :  { %363 = vmatprep.mubr.bf16.mxu0 %v640_v0  ;;  %404 = vmatprep.mubr.bf16.mxu1 %v640_v0 }
  0x29   :  { %413 = vmatprep.subr.bf16.mxu0 %v159_v48  ;;  %454 = vmatprep.subr.bf16.mxu1 %v165_v49 }
  0x2e   :  { %574 = vmatmul.mubr.msk.bf16.vlgmr.msra.gmra.mrb[8].mxu0 %vm111_vm2, %v30_v30  ;;  %575 = vmatmul.mubr.msk.bf16.vlgmr.msra.gmra.mrb[8].mxu1 %vm111_vm2, %v30_v30 }
  0x2f   :  { %414 = vmatpush1.bf16.msra.mxu0 %v156_v52  ;;  %455 = vmatpush1.bf16.msra.mxu1 %v162_v53 }
  0x30   :  { %445 = vmatprep.mubr.bf16.mxu0 %v640_v0  ;;  %486 = vmatprep.mubr.bf16.mxu1 %v640_v0 }
  0x36   :  { %576 = vmatmul.mubr.msk.bf16.vlgmr.msra.gmra.mrb[12].mxu0 %vm111_vm2, %v30_v30  ;;  %577 = vmatmul.mubr.msk.bf16.vlgmr.msra.gmra.mrb[12].mxu1 %vm111_vm2, %v30_v30 }
  0x9c   :  { %v511_v23 = vpop.permute.xlu0 %510 }
  0xf1   :  { %v201_v54 = vpop.f32.mrb[0].mxu0  ;;  %v242_v55 = vpop.f32.mrb[0].mxu1 }
  0xf2   :  { %v203_v56 = vpop.f32.mrb[1].mxu0  ;;  %v244_v57 = vpop.f32.mrb[1].mxu1 }
  0xf3   :  { %v205_v58 = vpop.f32.mrb[2].mxu0  ;;  %v246_v59 = vpop.f32.mrb[2].mxu1 }
  0xf4   :  { %v206_v60 = vpop.f32.mrb[3].mxu0  ;;  %v247_v61 = vpop.f32.mrb[3].mxu1 }
  0xf9   :  { %v283_v62 = vpop.f32.mrb[4].mxu0  ;;  %v324_v1 = vpop.f32.mrb[4].mxu1 }
  0xfa   :  { %v495_v63 = vmax.f32 %v201_v54, %v283_v62  ;;  %v285_v2 = vpop.f32.mrb[5].mxu0  ;;  %v497_v3 = vmax.f32 %v242_v55, %v324_v1  ;;  %v326_v5 = vpop.f32.mrb[5].mxu1 }
  0xfb   :  { %v496_v4 = vmax.f32 %v203_v56, %v285_v2  ;;  %v287_v0 = vpop.f32.mrb[6].mxu0  ;;  %v498_v6 = vmax.f32 %v244_v57, %v326_v5  ;;  %v328_v7 = vpop.f32.mrb[6].mxu1 }
  0xfc   :  { %v288_v8 = vpop.f32.mrb[7].mxu0  ;;  %v329_v9 = vpop.f32.mrb[7].mxu1 }
 0x101   :  { %v365_v10 = vpop.f32.mrb[8].mxu0  ;;  %v406_v12 = vpop.f32.mrb[8].mxu1 }
 0x102   :  { %v499_v11 = vmax.f32 %v495_v63, %v365_v10  ;;  %v367_v13 = vpop.f32.mrb[9].mxu0  ;;  %v501_v14 = vmax.f32 %v497_v3, %v406_v12  ;;  %v408_v16 = vpop.f32.mrb[9].mxu1 }
 0x103   :  { %v500_v15 = vmax.f32 %v496_v4, %v367_v13  ;;  %v369_v17 = vpop.f32.mrb[10].mxu0  ;;  %v502_v18 = vmax.f32 %v498_v6, %v408_v16  ;;  %v410_v19 = vpop.f32.mrb[10].mxu1 }
 0x104   :  { %v370_v20 = vpop.f32.mrb[11].mxu0  ;;  %v411_v21 = vpop.f32.mrb[11].mxu1 }
 0x109   :  { %v447_v22 = vpop.f32.mrb[12].mxu0  ;;  %v488_v25 = vpop.f32.mrb[12].mxu1 }
 0x10a   :  { %v503_v24 = vmax.f32 %v499_v11, %v447_v22  ;;  %v449_v26 = vpop.f32.mrb[13].mxu0  ;;  %v505_v27 = vmax.f32 %v501_v14, %v488_v25  ;;  %v490_v29 = vpop.f32.mrb[13].mxu1 }
 0x10b   :  { %v504_v28 = vmax.f32 %v500_v15, %v449_v26  ;;  %v451_v30 = vpop.f32.mrb[14].mxu0  ;;  %v506_v31 = vmax.f32 %v502_v18, %v490_v29  ;;  %v492_v33 = vpop.f32.mrb[14].mxu1 }
 0x10c   :  { %v513_v32 = vadd.f32 %v511_v23, %v503_v24  ;;  %v452_v34 = vpop.f32.mrb[15].mxu0  ;;  %v515_v36 = vadd.f32 %v511_v23, %v505_v27  ;;  %v493_v37 = vpop.f32.mrb[15].mxu1 }
 0x10d   :  { %v514_v35 = vadd.f32 %v511_v23, %v504_v28  ;;  %v516_v38 = vadd.f32 %v511_v23, %v506_v31 }
 0x10e   :  { %v517_v39 = vmax.f32 %v513_v32, 0.0  ;;  %v519_v41 = vmax.f32 %v515_v36, 0.0 }
 0x10f   :  { %v518_v40 = vmax.f32 %v514_v35, 0.0  ;;  %v520_v42 = vmax.f32 %v516_v38, 0.0 }
 0x111   :  { %v580_v43 = vpack.c.bf16 %v518_v40, %v517_v39  ;;  %v581_v44 = vpack.c.bf16 %v520_v42, %v519_v41 }
 0x113   :  { %537 = vst [vmem:[#allocation5] sm:$0xff] %v580_v43  ;;  %538 = vst [vmem:[#allocation5 + $0x8] sm:$0xff] %v581_v44 }
 0x114   :  { %622 = shalt.err (!%p619_p12)
}
 0x115   :  { %s623_s5 = scalar_lea.hbm %s731_s3, 256 }
 0x116   :  { %p624_p13 = scmp.ne.s32.totalorder %s731_s3, %s623_s5  ;;  %p627_p0 = scmp.lt.u32.totalorder %s623_s5, %s731_s3 }
 0x118   :  { %p629_p1 = pnand %p627_p0, %p624_p13 }
 0x11a   :  { %632 = shalt.err (!%p629_p1)
}
 0x11b   :  { %548 = dma.vmem_to_hbm [thread:$0]  %s546_s2, 256, %s731_s3, [#allocation4]  }
 0x11c   :  { %635 = dma.done.wait [#allocation4], 256  }
 0x11d   :  { %636 = vsyncadd [#allocation4], 4294967040 }
 0x11e   :  { %552 = vsyncpa [#allocation3], 1 }
 0x11f   :  { %553 = vsyncpa [#allocation4], 1 }

</bundles_post_ra>
